<compile_context>
chip_gen: v6e
topology: v6e:2x2x1
jax: 0.10.0
libtpu: 0.0.40
codegen_flags: <defaults>
</compile_context>

<pallas_src>
import jax
import jax.numpy as jnp
from jax.experimental import pallas as pl
from jax.experimental.pallas import tpu as pltpu

_LANE = 128
_WIDE_COLS = 1024                      # 8 vregs wide -> unmasked full-width vst
_MAX_BLOCK_BYTES = 2 * 1024 * 1024     # ~2 MiB per block; in+out double-buffered = 8 MiB VMEM


def _copy_kernel(x_ref, o_ref):
    # Identity copy of the current tile (VMEM -> VMEM).
    o_ref[...] = x_ref[...]


def _tiled_copy_2d(x2d, tile_rows):
    """Tiled identity copy of a 2D array; rows % tile_rows == 0."""
    rows, cols = x2d.shape
    grid = (rows // tile_rows,)
    return pl.pallas_call(
        _copy_kernel,
        out_shape=jax.ShapeDtypeStruct((rows, cols), x2d.dtype),
        grid=grid,
        in_specs=[pl.BlockSpec((tile_rows, cols), lambda i: (i, 0))],
        out_specs=pl.BlockSpec((tile_rows, cols), lambda i: (i, 0)),
        # Identity copy: allow XLA to write the output into the input's HBM
        # buffer instead of materializing a second allocation.
        input_output_aliases={0: 0},
        compiler_params=pltpu.CompilerParams(
            dimension_semantics=("parallel",),   # megacore-shardable on v7x
            vmem_limit_bytes=32 * 1024 * 1024,   # explicit headroom; usage ~8 MiB
        ),
    )(x2d)


def unsqueeze_pallas(x, dim):
    """Equivalent of torch.unsqueeze(x, dim); data movement done in Pallas."""
    ndim_out = x.ndim + 1
    if dim < 0:
        dim += ndim_out
    if not 0 <= dim < ndim_out:
        raise ValueError("unsqueeze dim out of range")
    out_shape = x.shape[:dim] + (1,) + x.shape[dim:]

    n = x.size
    if n == 0:
        # Nothing to copy; pure metadata change.
        return jnp.reshape(x, out_shape)

    itemsize = jnp.dtype(x.dtype).itemsize
    flat = x.reshape(-1)

    # Lane-dense flattening: wide last dimension (1024) when the array is big
    # enough, otherwise a single 128-lane row block.
    cols = _WIDE_COLS if n >= _WIDE_COLS else _LANE
    rows_needed = -(-n // cols)  # ceil

    if rows_needed * cols * itemsize <= _MAX_BLOCK_BYTES:
        # Whole (padded) array is one block; block dims == full array dims, so
        # the (8, 128) divisibility rule does not apply.
        tile_rows = rows_needed
    else:
        tile_rows = max(8, (_MAX_BLOCK_BYTES // (cols * itemsize)) // 8 * 8)
        # Keep row-padding waste bounded (< 1/8 of the real data).
        while tile_rows > 8 and (-rows_needed % tile_rows) * 8 > rows_needed:
            tile_rows //= 2

    rows_pad = -(-rows_needed // tile_rows) * tile_rows
    n_pad = rows_pad * cols

    if n_pad != n:
        # Unaligned size: pad to a whole number of blocks, slice off after.
        flat = jnp.pad(flat, (0, n_pad - n))

    y2d = _tiled_copy_2d(flat.reshape(rows_pad, cols), tile_rows)

    y_flat = y2d.reshape(-1)
    if n_pad != n:
        y_flat = y_flat[:n]

    # Metadata-only axis insertion (glue).
    return y_flat.reshape(out_shape)


if __name__ == "__main__":
    key = jax.random.PRNGKey(0)
    # NCHW input, as a PyTorch-style tensor would be.
    x = jax.random.normal(key, (2, 4, 16, 16), dtype=jnp.float32)

    # dim=1: (2, 4, 16, 16) -> (2, 1, 4, 16, 16)
    y = jax.block_until_ready(unsqueeze_pallas(x, 1))
    ref = jnp.expand_dims(x, 1)
    assert y.shape == ref.shape == (2, 1, 4, 16, 16), y.shape
    assert y.dtype == ref.dtype
    assert bool(jnp.array_equal(y, ref))

    # Negative dim, matching torch's convention.
    y_neg = jax.block_until_ready(unsqueeze_pallas(x, -1))
    assert y_neg.shape == (2, 4, 16, 16, 1)
    assert bool(jnp.array_equal(y_neg, jnp.expand_dims(x, -1)))

    # Multi-block aligned path: 4 MiB f32 -> 1-D grid of 2 x (512, 1024) blocks.
    xb = jax.random.normal(jax.random.PRNGKey(1), (16, 64, 1024), dtype=jnp.float32)
    yb = jax.block_until_ready(unsqueeze_pallas(xb, 0))
    assert yb.shape == (1, 16, 64, 1024)
    assert bool(jnp.array_equal(yb, jnp.expand_dims(xb, 0)))

    # Unaligned path (n not a multiple of 128): padded then sliced back.
    xu = jax.random.normal(jax.random.PRNGKey(2), (3, 5, 67), dtype=jnp.float32)
    yu = jax.block_until_ready(unsqueeze_pallas(xu, 2))
    assert yu.shape == (3, 5, 1, 67)
    assert bool(jnp.array_equal(yu, jnp.expand_dims(xu, 2)))

    print("KERNEL_OK")
</pallas_src>

<mosaic_0001>
module attributes {stable_mosaic.version = 11 : i64} {
  func.func @_copy_kernel(%arg0: i32, %arg1: memref<2x1024xf32, #tpu.memory_space<vmem>>, %arg2: memref<2x1024xf32, #tpu.memory_space<vmem>>) attributes {dimension_semantics = [#tpu.dimension_semantics<parallel>], iteration_bounds = array<i64: 1>, scalar_prefetch = 0 : i64, scratch_operands = 0 : i64, tpu.core_type = #tpu.core_type<tc>, window_params = [{transform_indices = @transform_0, window_bounds = array<i64: 2, 1024>}, {transform_indices = @transform_1, window_bounds = array<i64: 2, 1024>}]} {
    %c0 = arith.constant 0 : index
    %c0_0 = arith.constant 0 : index
    %0 = vector.load %arg1[%c0, %c0_0] : memref<2x1024xf32, #tpu.memory_space<vmem>>, vector<2x1024xf32>
    %c0_1 = arith.constant 0 : index
    %c0_2 = arith.constant 0 : index
    %1 = vector.load %arg2[%c0_1, %c0_2] : memref<2x1024xf32, #tpu.memory_space<vmem>>, vector<2x1024xf32>
    tpu.vector_store %arg2[%c0_1, %c0_2], %0 {strides = array<i32>} : memref<2x1024xf32, #tpu.memory_space<vmem>>, vector<2x1024xf32>,
    return
  }
  func.func @transform_0(%arg0: i32) -> (i32, i32) {
    %c0_i32 = arith.constant 0 : i32
    %c0_i32_0 = arith.constant 0 : i32
    return %arg0, %c0_i32 : i32, i32
  }
  func.func @transform_1(%arg0: i32) -> (i32, i32) {
    %c0_i32 = arith.constant 0 : i32
    %c0_i32_0 = arith.constant 0 : i32
    return %arg0, %c0_i32 : i32, i32
  }
}

</mosaic_0001>

<bundles_post_ra>
// kernel: tpu_custom_call.1
= control target key start
LH: loop header
LB: loop body
LE: loop exit
PB: predicated region body
PF: predicated region fallthrough
CT: control target
= control target key end

     0   :  { %6 = vsyncpa [#allocation3], 0  ;;  %s104_s0 = inlined_call_operand.hbm [shape: f32[2,1024], index: 0, kind: input, shape index: {}, may-alias: {0,1}]   ;;  %s105_s1 = inlined_call_operand.hbm [shape: f32[2,1024], index: 1, kind: output, shape index: {}, may-alias: {0,1}]  }
   0x1   :  { %7 = vsyncpa [#allocation4], 0  ;;  %s86_s6 = smov [#allocation2]  }
   0x2   :  { %s14_s7 = sshll.u32 %s86_s6, 4  ;;  %s15_s7 = int_to_ptr.vmem [resolvable:$true] %s14_s7 }
   0x3   :  { %s50_s8 = scalar_lea.vmem %s15_s7, 256  ;;  %p55_p1 = scmp.lt.s32.totalorder %s15_s7, %s15_s7 }
   0x4   :  { %p51_p0 = scmp.ne.s32.totalorder %s15_s7, %s50_s8  ;;  %p56_p2 = scmp.lt.s32.totalorder %s50_s8, %s50_s8 }
   0x6   :  { %p57_p3 = por %p56_p2, %p55_p1 }
   0x8   :  { %p58_p4 = pnand %p57_p3, %p51_p0 }
   0xa   :  { %61 = shalt.err (!%p58_p4)
}
   0xb   :  { %17 = dma.hbm_to_vmem [thread:$0]  %s104_s0, 256, %s15_s7, [#allocation3]  }
   0xc   :  { %82 = dma.done.wait [#allocation3], 256  }
   0xd   :  { %83 = vsyncadd [#allocation3], 4294967040  ;;  %s87_s11 = smov [#allocation5]   ;;  %v21_v0 = vld [vmem:[#allocation2] sm:$0xff]  ;;  %v22_v1 = vld [vmem:[#allocation2 + $0x8] sm:$0xff] }
   0xe   :  { %s31_s12 = sshll.u32 %s87_s11, 4  ;;  %23 = vst [vmem:[#allocation5] sm:$0xff] %v21_v0  ;;  %24 = vst [vmem:[#allocation5 + $0x8] sm:$0xff] %v22_v1  ;;  %s32_s12 = int_to_ptr.vmem [resolvable:$true] %s31_s12 }
   0xf   :  { %s62_s13 = scalar_lea.vmem %s32_s12, 256  ;;  %p67_p6 = scmp.lt.s32.totalorder %s32_s12, %s32_s12 }
  0x10   :  { %p63_p5 = scmp.ne.s32.totalorder %s32_s12, %s62_s13  ;;  %p68_p7 = scmp.lt.s32.totalorder %s62_s13, %s62_s13 }
  0x12   :  { %p69_p8 = por %p68_p7, %p67_p6 }
  0x14   :  { %p70_p9 = pnand %p69_p8, %p63_p5 }
  0x16   :  { %73 = shalt.err (!%p70_p9)
}
  0x17   :  { %34 = dma.vmem_to_hbm [thread:$0]  %s32_s12, 256, %s105_s1, [#allocation4]  }
  0x18   :  { %84 = dma.done.wait [#allocation4], 256  }
  0x19   :  { %85 = vsyncadd [#allocation4], 4294967040 }
  0x1a   :  { %38 = vsyncpa [#allocation3], 1 }
  0x1b   :  { %39 = vsyncpa [#allocation4], 1 }

</bundles_post_ra>
